<compile_context>
chip_gen: v7x
topology: tpu7x:2x2x1
jax: 0.10.0
libtpu: 0.0.40
codegen_flags: <defaults>
</compile_context>

<pallas_src>
import math

import jax
import jax.numpy as jnp
from jax import lax
from jax.experimental import pallas as pl
from jax.experimental.pallas import tpu as pltpu

LN_EPS = 1e-5  # torch.nn.LayerNorm default eps


def latent_psl_kernel(x_ref, theta_ref, gamma_ref, beta_ref, out_ref):
    B, L, D = x_ref.shape
    P = theta_ref.shape[0]

    x = x_ref[...]            # (B, L, D)   bf16
    theta = theta_ref[...]    # (P, D)      bf16
    gamma = gamma_ref[...]    # (1, D)      f32
    beta = beta_ref[...]      # (1, D)      f32

    # v2l graph adjacency: one (B*L, D) x (P, D)^T MXU pass, bf16 operands,
    # f32 accumulation.  NOTE: the flatten/unflatten is only a free relayout
    # when L % 8 == 0 (sublane tile); otherwise it materializes a VMEM copy.
    adj = lax.dot_general(
        x.reshape(B * L, D), theta,
        dimension_numbers=(((1,), (1,)), ((), ())),
        preferred_element_type=jnp.float32).reshape(B, L, P)

    # Numerically-stabilized softmax over the sequence axis (torch dim=1) with
    # normalization deferred to the output.  (For realistic L >= 128 a
    # (B, P, L) relayout would make these reductions lane-dense; at the small
    # demo L it would only add XLU transposes.)
    m = jnp.max(adj, axis=1, keepdims=True)            # (B, 1, P)
    p_exp = jnp.exp(adj - m)                            # (B, L, P)  f32
    denom = jnp.sum(p_exp, axis=1, keepdims=True)       # (B, 1, P)

    # out_un[b, p, d] = sum_l p_exp[b, l, p] * x[b, l, d] -- contraction on L,
    # bf16 operands into the MXU, f32 accumulation, no materialized att.T.
    out_un = lax.dot_general(
        p_exp.astype(jnp.bfloat16), x,
        dimension_numbers=(((1,), (1,)), ((0,), (0,))),
        preferred_element_type=jnp.float32)             # (B, P, D)  f32

    # Deferred softmax normalization: one exact divide per (b, p), broadcast
    # over the lane-dense D axis of the output.
    inv = jnp.swapaxes(1.0 / denom, -1, -2)              # (B, P, 1)
    out = out_un * inv

    # out_norm: Tanh -> LayerNorm(D) (affine).  Dropout skipped (eval mode).
    h = jnp.tanh(out)
    mean = jnp.mean(h, axis=-1, keepdims=True)
    var = jnp.mean((h - mean) ** 2, axis=-1, keepdims=True)
    y = (h - mean) * lax.rsqrt(var + LN_EPS)
    y = y * gamma[None, :, :] + beta[None, :, :]

    out_ref[...] = y.astype(out_ref.dtype)


def _pick_batch_block(bs, L, P, D, in_bytes, out_bytes,
                      vmem_block_budget_bytes=8 << 20, min_grid_steps=4):
    """Largest divisor of bs whose double-buffered in+out blocks fit the VMEM
    budget while keeping >= min_grid_steps grid steps (>= 2 per v7x core)."""
    per_batch = 2 * (L * D * in_bytes + P * D * out_bytes)   # 2x: double-buffer
    vmem_cap = max(1, vmem_block_budget_bytes // per_batch)
    depth_cap = max(1, bs // min_grid_steps)
    b_blk = max(1, min(bs, vmem_cap, depth_cap))
    while bs % b_blk:
        b_blk -= 1
    return b_blk


def latent_psl_forward(input_seq, theta, ln_gamma, ln_beta, *,
                       batch_block=None, out_dtype=None):
    bs, L, D = input_seq.shape
    P, D2 = theta.shape
    assert D == D2, "theta must be (num_psl, input_size)"

    compute_dtype = jnp.bfloat16
    out_dtype = input_seq.dtype if out_dtype is None else out_dtype

    x = input_seq.astype(compute_dtype)      # no wrapper-side f32 upcast
    th = theta.astype(compute_dtype)         # (P, D); no transpose materialized
    gamma2 = ln_gamma.reshape(1, D).astype(jnp.float32)
    beta2 = ln_beta.reshape(1, D).astype(jnp.float32)

    if batch_block is None:
        batch_block = _pick_batch_block(
            bs, L, P, D,
            in_bytes=jnp.dtype(compute_dtype).itemsize,
            out_bytes=jnp.dtype(out_dtype).itemsize)
    assert bs % batch_block == 0
    grid = (bs // batch_block,)

    return pl.pallas_call(
        latent_psl_kernel,
        out_shape=jax.ShapeDtypeStruct((bs, P, D), out_dtype),
        grid_spec=pltpu.PrefetchScalarGridSpec(
            num_scalar_prefetch=0,
            grid=grid,
            in_specs=[
                pl.BlockSpec((batch_block, L, D), lambda b: (b, 0, 0)),
                pl.BlockSpec((P, D), lambda b: (0, 0)),
                pl.BlockSpec((1, D), lambda b: (0, 0)),
                pl.BlockSpec((1, D), lambda b: (0, 0)),
            ],
            out_specs=pl.BlockSpec((batch_block, P, D), lambda b: (b, 0, 0)),
        ),
        compiler_params=pltpu.CompilerParams(
            dimension_semantics=("parallel",),
            vmem_limit_bytes=32 << 20,   # explicit: safe on v5e/v6e/v7x
        ),
    )(x, th, gamma2, beta2)


def ref_forward(input_seq, theta, gamma, beta):
    """Pure-JAX f32 mirror of the PyTorch forward (eval mode, dropout = id)."""
    adj = input_seq @ theta.T                          # (bs, L, P)
    adj = jax.nn.softmax(adj, axis=1)
    out = jnp.swapaxes(adj, -1, -2) @ input_seq        # (bs, P, D)
    h = jnp.tanh(out)
    mean = h.mean(-1, keepdims=True)
    var = ((h - mean) ** 2).mean(-1, keepdims=True)
    y = (h - mean) / jnp.sqrt(var + LN_EPS)
    return y * gamma + beta


def xavier_uniform(key, shape, gain):
    bound = gain * math.sqrt(6.0 / (shape[0] + shape[1]))
    return jax.random.uniform(key, shape, jnp.float32, -bound, bound)


if __name__ == "__main__":
    bs, seq_len = 4, 16
    input_size, num_psl = 128, 8          # lane-dense feature dim
    gain = 5.0 / 3.0                      # nn.init.calculate_gain('tanh')

    key = jax.random.PRNGKey(0)
    k_theta, k_x = jax.random.split(key, 2)

    theta = xavier_uniform(k_theta, (num_psl, input_size), gain)
    ln_gamma = jnp.ones((input_size,), jnp.float32)   # LayerNorm default init
    ln_beta = jnp.zeros((input_size,), jnp.float32)

    # Caller holds activations in bf16 (feeds the MXU directly, halves DMA).
    input_seq = jax.random.normal(
        k_x, (bs, seq_len, input_size), jnp.float32).astype(jnp.bfloat16)

    out = latent_psl_forward(input_seq, theta, ln_gamma, ln_beta)
    out = jax.block_until_ready(out)
    assert out.shape == (bs, num_psl, input_size)
    assert out.dtype == jnp.bfloat16

    # f32 reference on the same bf16-quantized inputs the kernel sees.
    ref = ref_forward(input_seq.astype(jnp.float32),
                      theta.astype(jnp.bfloat16).astype(jnp.float32),
                      ln_gamma, ln_beta)
    out_f32 = out.astype(jnp.float32)
    # Tolerance covers bf16 MXU operands (p_exp quantization) and bf16 output
    # rounding vs. the f32 reference; softmax normalization is an exact divide.
    assert jnp.allclose(out_f32, ref, atol=5e-2, rtol=5e-2), \
        f"max abs err {jnp.max(jnp.abs(out_f32 - ref))}"

    print("KERNEL_OK")
</pallas_src>

<mosaic_0001>
module attributes {stable_mosaic.version = 11 : i64} {
  func.func @latent_psl_kernel(%arg0: i32, %arg1: memref<1x16x128xbf16, #tpu.memory_space<vmem>>, %arg2: memref<8x128xbf16, #tpu.memory_space<vmem>>, %arg3: memref<1x128xf32, #tpu.memory_space<vmem>>, %arg4: memref<1x128xf32, #tpu.memory_space<vmem>>, %arg5: memref<1x8x128xbf16, #tpu.memory_space<vmem>>) attributes {dimension_semantics = [#tpu.dimension_semantics<parallel>], iteration_bounds = array<i64: 4>, scalar_prefetch = 0 : i64, scratch_operands = 0 : i64, tpu.core_type = #tpu.core_type<tc>, window_params = [{transform_indices = @transform_0, window_bounds = array<i64: 1, 16, 128>}, {pipeline_mode = #tpu.pipeline_mode<synchronous>, transform_indices = @transform_1, window_bounds = array<i64: 8, 128>}, {pipeline_mode = #tpu.pipeline_mode<synchronous>, transform_indices = @transform_2, window_bounds = array<i64: 1, 128>}, {pipeline_mode = #tpu.pipeline_mode<synchronous>, transform_indices = @transform_3, window_bounds = array<i64: 1, 128>}, {transform_indices = @transform_4, window_bounds = array<i64: 1, 8, 128>}]} {
    %c0 = arith.constant 0 : index
    %c0_0 = arith.constant 0 : index
    %c0_1 = arith.constant 0 : index
    %0 = vector.load %arg1[%c0, %c0_0, %c0_1] : memref<1x16x128xbf16, #tpu.memory_space<vmem>>, vector<1x16x128xbf16>
    %c0_2 = arith.constant 0 : index
    %c0_3 = arith.constant 0 : index
    %1 = vector.load %arg2[%c0_2, %c0_3] : memref<8x128xbf16, #tpu.memory_space<vmem>>, vector<8x128xbf16>
    %c0_4 = arith.constant 0 : index
    %c0_5 = arith.constant 0 : index
    %2 = vector.load %arg3[%c0_4, %c0_5] : memref<1x128xf32, #tpu.memory_space<vmem>>, vector<1x128xf32>
    %c0_6 = arith.constant 0 : index
    %c0_7 = arith.constant 0 : index
    %3 = vector.load %arg4[%c0_6, %c0_7] : memref<1x128xf32, #tpu.memory_space<vmem>>, vector<1x128xf32>
    %4 = vector.shape_cast %0 : vector<1x16x128xbf16> to vector<16x128xbf16>
    %cst = arith.constant dense<0.000000e+00> : vector<16x8xf32>
    %5 = tpu.matmul %4, %1, %cst {dimension_numbers = #tpu.dot_dimension_numbers<[1], [1], [0], [0], [0, 0, 1, 0], [], []>} : vector<16x128xbf16>, vector<8x128xbf16>, vector<16x8xf32> -> vector<16x8xf32>
    %6 = vector.shape_cast %5 : vector<16x8xf32> to vector<1x16x8xf32>
    %cst_8 = arith.constant dense<0xFF800000> : vector<1x8xf32>
    %7 = vector.multi_reduction <maximumf>, %6, %cst_8 [1] : vector<1x16x8xf32> to vector<1x8xf32>
    %8 = vector.shape_cast %7 : vector<1x8xf32> to vector<1x1x8xf32>
    %9 = vector.broadcast %8 : vector<1x1x8xf32> to vector<1x16x8xf32>
    %10 = arith.subf %6, %9 : vector<1x16x8xf32>
    %11 = math.exp %10 : vector<1x16x8xf32>
    %cst_9 = arith.constant dense<0.000000e+00> : vector<1x8xf32>
    %12 = vector.multi_reduction <add>, %11, %cst_9 [1] : vector<1x16x8xf32> to vector<1x8xf32>
    %13 = vector.shape_cast %12 : vector<1x8xf32> to vector<1x1x8xf32>
    %14 = arith.truncf %11 : vector<1x16x8xf32> to vector<1x16x8xbf16>
    %cst_10 = arith.constant dense<0.000000e+00> : vector<1x8x128xf32>
    %15 = tpu.matmul %14, %0, %cst_10 {dimension_numbers = #tpu.dot_dimension_numbers<[1], [1], [2], [2], [0, 0, 0, 2, 1, 2], [0], [0]>} : vector<1x16x8xbf16>, vector<1x16x128xbf16>, vector<1x8x128xf32> -> vector<1x8x128xf32>
    %cst_11 = arith.constant 1.000000e+00 : f32
    %16 = vector.broadcast %cst_11 : f32 to vector<1x1x8xf32>
    %17 = arith.divf %16, %13 : vector<1x1x8xf32>
    %18 = tpu.transpose %17, [0, 2, 1] : vector<1x1x8xf32> -> vector<1x8x1xf32>
    %19 = vector.broadcast %18 : vector<1x8x1xf32> to vector<1x8x128xf32>
    %20 = arith.mulf %15, %19 : vector<1x8x128xf32>
    %21 = math.tanh %20 : vector<1x8x128xf32>
    %cst_12 = arith.constant dense<0.000000e+00> : vector<1x8xf32>
    %22 = vector.multi_reduction <add>, %21, %cst_12 [2] : vector<1x8x128xf32> to vector<1x8xf32>
    %23 = vector.shape_cast %22 : vector<1x8xf32> to vector<1x8x1xf32>
    %cst_13 = arith.constant 1.280000e+02 : f32
    %24 = vector.broadcast %cst_13 : f32 to vector<1x8x1xf32>
    %25 = arith.divf %23, %24 : vector<1x8x1xf32>
    %26 = vector.broadcast %25 : vector<1x8x1xf32> to vector<1x8x128xf32>
    %27 = arith.subf %21, %26 : vector<1x8x128xf32>
    %28 = arith.mulf %27, %27 : vector<1x8x128xf32>
    %cst_14 = arith.constant dense<0.000000e+00> : vector<1x8xf32>
    %29 = vector.multi_reduction <add>, %28, %cst_14 [2] : vector<1x8x128xf32> to vector<1x8xf32>
    %30 = vector.shape_cast %29 : vector<1x8xf32> to vector<1x8x1xf32>
    %cst_15 = arith.constant 1.280000e+02 : f32
    %31 = vector.broadcast %cst_15 : f32 to vector<1x8x1xf32>
    %32 = arith.divf %30, %31 : vector<1x8x1xf32>
    %33 = vector.broadcast %25 : vector<1x8x1xf32> to vector<1x8x128xf32>
    %34 = arith.subf %21, %33 : vector<1x8x128xf32>
    %cst_16 = arith.constant 9.99999974E-6 : f32
    %35 = vector.broadcast %cst_16 : f32 to vector<1x8x1xf32>
    %36 = arith.addf %32, %35 : vector<1x8x1xf32>
    %37 = math.rsqrt %36 : vector<1x8x1xf32>
    %38 = vector.broadcast %37 : vector<1x8x1xf32> to vector<1x8x128xf32>
    %39 = arith.mulf %34, %38 : vector<1x8x128xf32>
    %40 = vector.shape_cast %2 : vector<1x128xf32> to vector<1x1x128xf32>
    %41 = vector.broadcast %40 : vector<1x1x128xf32> to vector<1x8x128xf32>
    %42 = arith.mulf %39, %41 : vector<1x8x128xf32>
    %43 = vector.shape_cast %3 : vector<1x128xf32> to vector<1x1x128xf32>
    %44 = vector.broadcast %43 : vector<1x1x128xf32> to vector<1x8x128xf32>
    %45 = arith.addf %42, %44 : vector<1x8x128xf32>
    %46 = arith.truncf %45 : vector<1x8x128xf32> to vector<1x8x128xbf16>
    %c0_17 = arith.constant 0 : index
    %c0_18 = arith.constant 0 : index
    %c0_19 = arith.constant 0 : index
    %47 = vector.load %arg5[%c0_17, %c0_18, %c0_19] : memref<1x8x128xbf16, #tpu.memory_space<vmem>>, vector<1x8x128xbf16>
    tpu.vector_store %arg5[%c0_17, %c0_18, %c0_19], %46 {strides = array<i32>} : memref<1x8x128xbf16, #tpu.memory_space<vmem>>, vector<1x8x128xbf16>,
    return
  }
  func.func @transform_0(%arg0: i32) -> (i32, i32, i32) {
    %c0_i32 = arith.constant 0 : i32
    %c0_i32_0 = arith.constant 0 : i32
    %c0_i32_1 = arith.constant 0 : i32
    return %arg0, %c0_i32, %c0_i32_0 : i32, i32, i32
  }
  func.func @transform_1(%arg0: i32) -> (i32, i32) {
    %c0_i32 = arith.constant 0 : i32
    %c0_i32_0 = arith.constant 0 : i32
    %c0_i32_1 = arith.constant 0 : i32
    return %c0_i32, %c0_i32_0 : i32, i32
  }
  func.func @transform_2(%arg0: i32) -> (i32, i32) {
    %c0_i32 = arith.constant 0 : i32
    %c0_i32_0 = arith.constant 0 : i32
    %c0_i32_1 = arith.constant 0 : i32
    return %c0_i32, %c0_i32_0 : i32, i32
  }
  func.func @transform_3(%arg0: i32) -> (i32, i32) {
    %c0_i32 = arith.constant 0 : i32
    %c0_i32_0 = arith.constant 0 : i32
    %c0_i32_1 = arith.constant 0 : i32
    return %c0_i32, %c0_i32_0 : i32, i32
  }
  func.func @transform_4(%arg0: i32) -> (i32, i32, i32) {
    %c0_i32 = arith.constant 0 : i32
    %c0_i32_0 = arith.constant 0 : i32
    %c0_i32_1 = arith.constant 0 : i32
    return %arg0, %c0_i32, %c0_i32_0 : i32, i32, i32
  }
}

</mosaic_0001>

<bundles_post_ra>
// kernel: tpu_custom_call.1
= control target key start
LH: loop header
LB: loop body
LE: loop exit
PB: predicated region body
PF: predicated region fallthrough
CT: control target
= control target key end

     0   :  { %9 = vsyncpa [#allocation3], 0  ;;  %s1010_s0 = inlined_call_operand.hbm [shape: bf16[4,16,128], index: 0, kind: input, shape index: {}]   ;;  %s1011_s1 = inlined_call_operand.hbm [shape: bf16[8,128], index: 1, kind: input, shape index: {}]   ;;  %s1012_s2 = inlined_call_operand.vmem [shape: f32[1,128], index: 2, kind: input, shape index: {}]   ;;  %s1013_s3 = inlined_call_operand.vmem [shape: f32[1,128], index: 3, kind: input, shape index: {}]   ;;  %s1014_s4 = inlined_call_operand.hbm [shape: bf16[4,8,128], index: 4, kind: output, shape index: {}]  }
   0x1   :  { %11 = vsyncpa [#allocation3 + $0x1], 0 }
   0x2   :  { %12 = vsyncpa [#allocation6], 0 }
   0x3   :  { %13 = vsyncpa [#allocation4], 0 }
   0x4   :  { %15 = vsyncpa [#allocation4 + $0x1], 0  ;;  %s805_s15 = smov 0   ;;  %s807_s16 = smov 0  }
   0x5   :  { %s809_s17 = smov 0   ;;  %s811_s18 = smov 0  }
   0x6 LB: > { %s826_s19 = sadd.s32 4294967295, %s770_s18   ;;  %s531_s20 = sadd.s32 4294967294, %s770_s18   ;;  %s770_s18 = sphi %s811_s18, %s1037_s18   ;;  %s766_s17 = sphi %s809_s17, %s1036_s17   ;;  %s762_s16 = sphi %s807_s16, %s1035_s16   ;;  %s758_s15 = sphi %s805_s15, %s1034_s15  }
   0x7   : > { %s830_s21 = sadd.s32 1, %s770_s18   ;;  %s28_s22 = sadd.s32 1, %s766_s17 }
   0x8   : > { %s25_s23 = ssub.s32 %s770_s18, %s830_s21  ;;  %p35_p0 = scmp.ne.s32.totalorder %s766_s17, %s762_s16 }
   0x9   : > { %p26_p1 = scmp.eq.s32.totalorder %s25_s23, 0  ;;  %p36_p2 = scmp.eq.s32.totalorder %s770_s18, 0 }
   0xa   : > { %p41_p3 = scmp.ne.s32.totalorder %s762_s16, %s758_s15  ;;  %p1015_p4 = scmp.eq.s32.totalorder %s826_s19, 0 }
   0xb   : > { %s842_s24 = scalar_select %p26_p1, %s766_s17, %s28_s22  }
   0xc   : > { %p844_p5 = por %p36_p2, %p35_p0  ;;  %p850_p6 = por %p1015_p4, %p41_p3 }
   0xd   : > { %p128_p7 = scmp.eq.s32.totalorder %s826_s19, 3  ;;  %p134_p8 = scmp.eq.s32.totalorder %s531_s20, 3 }
   0xe   : > { %s1021_s26 = scalar_select %p850_p6, 1, 0 }
   0xf   : > { %p532_p9 = scmp.ge.s32.totalorder %s770_s18, 1  ;;  %p141_p10 = scmp.lt.s32.totalorder %s770_s18, 5 }
  0x10   : > { %p857_p11 = por %p128_p7, %p35_p0  ;;  %p861_p12 = por %p134_p8, %p41_p3 }
  0x11   : > { %p865_p13 = pnand %p532_p9, %p141_p10  ;;  %s772_s30 = smov [#allocation5]  }
  0x12   : > { %s1022_s27 = scalar_select %p857_p11, 1, 0 }
  0x13   : > { %s1023_s28 = scalar_select %p861_p12, 1, 0 }
  0x14   : > { %s1024_s29 = scalar_select %p865_p13, 1, 0 }
  0x15   : > { %p575_p1 = pneg %p865_p13  ;;  %s154_s5 = sshll.u32 %s772_s30, 4  ;;  %s155_s5 = int_to_ptr.vmem [resolvable:$true] %s154_s5 }
  0x16   : > { %p588_p2 = scmp.lt.s32.totalorder %s770_s18, 4  ;;  %s171_s7 = sand.u32 1, %s766_s17  }
  0x17   : > { %p874_p0 = pnand %p575_p1, %p1015_p4  ;;  %s535_s9 = sshll.u32 %s171_s7, 3 }
  0x18   : > { %p881_p3 = pnand %p588_p2, %p844_p5  ;;  %s642_s12 = scalar_lea.hbm %s1011_s1, 64 }
  0x19   : > { %p643_p7 = scmp.ne.s32.totalorder %s1011_s1, %s642_s12  ;;  %p644_p8 = pneg %p874_p0 }
  0x1a   : > { %s1026_s8 = scalar_select %p881_p3, 1, 0 }
  0x1b   : > { %p645_p9 = pnand %p644_p8, %p643_p7  ;;  %p649_p5 = scmp.lt.u32.totalorder %s642_s12, %s1011_s1 }
  0x1d   : > { %p646_p10 = pneg %p645_p9 }
  0x1f   : > { %p651_p1 = pnand %p649_p5, %p646_p10 }
  0x21   : > { %654 = shalt.err (!%p651_p1)
}
  0x22   : > { %s655_s23 = scalar_lea.vmem %s155_s5, 64  ;;  %p663_p11 = scmp.lt.s32.totalorder %s155_s5, %s155_s5 }
  0x23   : > { %p656_p2 = scmp.ne.s32.totalorder %s155_s5, %s655_s23  ;;  %p664_p6 = scmp.lt.s32.totalorder %s655_s23, %s655_s23 }
  0x25   : > { %p658_p4 = pnand %p656_p2, %p644_p8  ;;  %p665_p13 = por %p664_p6, %p663_p11 }
  0x27   : > { %p659_p12 = pneg %p658_p4 }
  0x29   : > { %p666_p3 = pnand %p665_p13, %p659_p12 }
  0x2b   : > { %669 = shalt.err (!%p666_p3)
}
  0x2c   : > { %578 = dma.hbm_to_vmem [thread:$0]  (!%p874_p0), %s1011_s1, 64, %s155_s5, [#allocation6]  }
  0x2d   : > { %s550_s10 = sshll.u32 %s770_s18, 7  ;;  %s175_s11 = scalar_lea.vmem [#allocation2], %s535_s9 }
  0x2e   : > { %s182_s12 = sshll.u32 %s175_s11, 4  ;;  %s905_s20 = scalar_lea.hbm %s1010_s0, %s550_s10  ;;  %s907_s12 = int_to_ptr.vmem [resolvable:$true] %s182_s12 }
  0x2f   : > { %s909_s6 = scalar_lea.sflag [#allocation3], %s171_s7  ;;  %s670_s22 = scalar_lea.hbm %s905_s20, 128 }
  0x30   : > { %p671_p4 = scmp.ne.s32.totalorder %s905_s20, %s670_s22  ;;  %p1027_p6 = scmp.ne.s32.totalorder %s1026_s8, 0 }
  0x31   : > { %s675_s23 = scalar_lea.hbm %s1010_s0, 512  ;;  %p676_p0 = scmp.lt.u32.totalorder %s905_s20, %s1010_s0 }
  0x32   : > { %p672_p11 = pneg %p1027_p6  ;;  %p677_p3 = scmp.lt.u32.totalorder %s675_s23, %s670_s22 }
  0x33   : > { %p679_p8 = scmp.lt.u32.totalorder %s670_s22, %s905_s20 }
  0x34   : > { %p673_p12 = pnand %p672_p11, %p671_p4  ;;  %p678_p7 = por %p677_p3, %p676_p0 }
  0x36   : > { %p674_p13 = pneg %p673_p12  ;;  %p680_p9 = por %p679_p8, %p678_p7 }
  0x38   : > { %p681_p10 = pnand %p680_p9, %p674_p13 }
  0x3a   : > { %684 = shalt.err (!%p681_p10)
}
  0x3b   : > { %s685_s7 = scalar_lea.vmem %s907_s12, 128  ;;  %s773_s10 = smov [#allocation2]  }
  0x3c   : > { %p686_p5 = scmp.ne.s32.totalorder %s907_s12, %s685_s7  ;;  %s690_s11 = sshll.u32 %s773_s10, 4  ;;  %s691_s11 = int_to_ptr.vmem [resolvable:$false] %s690_s11 }
  0x3d   : > { %s692_s13 = scalar_lea.vmem %s691_s11, 256  ;;  %p693_p4 = scmp.lt.s32.totalorder %s907_s12, %s691_s11 }
  0x3e   : > { %p688_p1 = pnand %p686_p5, %p672_p11  ;;  %p694_p12 = scmp.lt.s32.totalorder %s692_s13, %s685_s7 }
  0x40   : > { %p689_p2 = pneg %p688_p1  ;;  %p695_p0 = por %p694_p12, %p693_p4 }
  0x42   : > { %p696_p3 = pnand %p695_p0, %p689_p2 }
  0x44   : > { %699 = shalt.err (!%p696_p3)
}
  0x45   : > { %s774_s14 = smov 64   ;;  %s775_s22 = smov 4  }
  0x46   : > { %582 = dma.hbm_to_vmem [thread:$0]  (!%p1027_p6), %s905_s20, 128, %s907_s12, %s909_s6, %s774_s14, %s774_s14, %s775_s22  }
  0x47   : > { %p1028_p11 = scmp.ne.s32.totalorder %s1024_s29, 0 }
  0x48   : > { %s940_s5 = sand.u32 (!%p1028_p11), 1, %s762_s16   ;;  %p1029_p13 = scmp.ne.s32.totalorder (!%p1028_p11), %s1021_s26, 0 }
  0x49   : > { %194 = sbr.rel (%p1028_p11) target bundleno = 996 (0x3e4), region = 36  ;;  %s539_s9 = sshll.u32 (!%p1028_p11), %s940_s5, 3 }
  0x4a   : > { %s197_s23 = scalar_lea.sflag (!%p1028_p11), [#allocation3], %s940_s5  ;;  %s200_s25 = scalar_lea.vmem (!%p1028_p11), [#allocation2], %s539_s9 }
  0x50   : > { %745 = dma.done.wait (%p1029_p13), %s197_s23, 128  }
  0x51   : > { %747 = vsyncadd (%p1029_p13), %s197_s23, 4294967168  ;;  %p1030_p7 = scmp.eq.s32.totalorder %s826_s19, 0 }
  0x53   : > { %749 = dma.done.wait (%p1030_p7), [#allocation6], 64   ;;  %p1031_p6 = pmov %p1030_p7 }
  0x54   : > { %v776_v0 = vmov 0.0   ;;  %vm777_vm0 = vmmov 0   ;;  %v232_v1 = vld [vmem:[#allocation5] sm:$0xf]  ;;  %v631_v2 = vld [vmem:[%s200_s25] sm:$0xff]   ;;  %vm282_vm1 = vcmask 64512  }
  0x55   : > { %751 = vsyncadd (%p1031_p6), [#allocation6], 4294967232  ;;  %555 = vmatprep.subr.bf16.mxu0 %v776_v0  ;;  %557 = vmatprep.mubr.msk.bf16.mxu0 %vm777_vm0, %v776_v0  ;;  %v778_v14 = vmov 0   ;;  %vm324_vm2 = vcmask 130048   ;;  %s541_s26 = sshll.u32 %s940_s5, 2  ;;  %s547_s6 = sshll.u32 %s826_s19, 6 }
  0x56   : > { %561 = vmatprep.subr.bf16.mxu1 %v776_v0  ;;  %563 = vmatprep.mubr.msk.bf16.mxu1 %vm777_vm0, %v776_v0  ;;  %v544_v51 = vld [vmem:[%s1012_s2] ss:$0 sm:$0xff]  ;;  %s228_s30 = scalar_lea.vmem [#allocation7], %s541_s26  ;;  %s967_s13 = scalar_lea.hbm %s1014_s4, %s547_s6 }
  0x57   : > { %556 = vmatpush3.bf16.xpose.msra.mxu0 %v232_v1  ;;  %562 = vmatpush3.bf16.msra.mxu1 %v631_v2  ;;  %v545_v53 = vld [vmem:[%s1013_s3] ss:$0 sm:$0xff]  ;;  %s451_s7 = sshll.u32 %s228_s30, 4  ;;  %s438_s14 = scalar_lea.sflag [#allocation4], %s940_s5  ;;  %s969_s7 = int_to_ptr.vmem [resolvable:$true] %s451_s7 }
  0x58   : > { %629 = vset.pattern.permute.xlu1 %v778_v14  ;;  %s700_s22 = scalar_lea.vmem %s969_s7, 64  ;;  %p1032_p9 = scmp.ne.s32.totalorder %s1022_s27, 0 }
  0x59   : > { %p701_p8 = scmp.ne.s32.totalorder %s969_s7, %s700_s22  ;;  %s779_s19 = smov [#allocation7]  }
  0x5a   : > { %s704_s9 = sshll.u32 %s779_s19, 4  ;;  %s705_s9 = int_to_ptr.vmem [resolvable:$false] %s704_s9 }
  0x5b   : > { %p702_p10 = pnand %p701_p8, %p1032_p9  ;;  %s706_s23 = scalar_lea.vmem %s705_s9, 128 }
  0x5c   : > { %p707_p1 = scmp.lt.s32.totalorder %s969_s7, %s705_s9  ;;  %p708_p2 = scmp.lt.s32.totalorder %s706_s23, %s700_s22 }
  0x5d   : > { %p703_p5 = pneg %p702_p10 }
  0x5e   : > { %558 = vmatmul.mubr.bf16.vlgmr.msra.gmra.mrb[0].mxu0 %v631_v2  ;;  %p709_p4 = por %p708_p2, %p707_p1 }
  0x60   : > { %p710_p12 = pnand %p709_p4, %p703_p5 }
 0x131   : > { %v275_v3 = vpop.f32.mrb[0].mxu0 }
 0x132   : > { %v559_v4 = vpop.f32.mrb[1].mxu0  ;;  %v283_v6 = vsel %vm282_vm1, %v275_v3, -inf }
 0x133   : > { %v278_v5 = vpop.f32.mrb[2].mxu0 }
 0x134   : > { %v284_v7 = vsel %vm282_vm1, %v278_v5, -inf  ;;  %v560_v8 = vpop.f32.mrb[3].mxu0 }
 0x135   : > { %v285_v9 = vmax.f32 %v283_v6, %v284_v7 }
 0x137   : > { %v286_v10 = vrot.slane %v285_v9, 4 }
 0x139   : > { %v287_v11 = vmax.f32 %v285_v9, %v286_v10 }
 0x13b   : > { %v288_v12 = vrot.slane %v287_v11, 2 }
 0x13d   : > { %v289_v13 = vmax.f32 %v287_v11, %v288_v12 }
 0x13f   : > { %v290_v15 = vrot.slane %v289_v13, 1 }
 0x141   : > { %v291_v16 = vmax.f32 %v289_v13, %v290_v15 }
 0x143   : > { %v292_v17 = vsub.f32 %v275_v3, %v291_v16  ;;  %v293_v18 = vsub.f32 %v278_v5, %v291_v16 }
 0x145   : > { %v294_v19 = vmul.f32 1.442695, %v292_v17  ;;  %v296_v20 = vmul.f32 1.442695, %v293_v18 }
 0x147   : > { %632 = vpow2.f32 %v294_v19 }
 0x148   : > { %634 = vpow2.f32 %v296_v20 }
 0x151   : > { %v633_v21 = vpop.eup %632 }
 0x152   : > { %v635_v22 = vpop.eup %634  ;;  %v298_v23 = vsel %vm282_vm1, %v633_v21, 0.0 }
 0x153   : > { %v299_v24 = vsel %vm282_vm1, %v635_v22, 0.0  ;;  %v307_v25 = vpack.c.bf16 %v635_v22, %v633_v21 }
 0x154   : > { %v300_v26 = vadd.f32 %v299_v24, %v298_v23 }
 0x155   : > { %308 = vxpose.xlu0.c.b16.start.end [1/1] (short) (narrow) %v307_v25, 16 }
 0x156   : > { %v301_v27 = vrot.slane %v300_v26, 4 }
 0x158   : > { %v302_v28 = vadd.f32 %v301_v27, %v300_v26 }
 0x15a   : > { %v303_v29 = vrot.slane %v302_v28, 2 }
 0x15c   : > { %v304_v30 = vadd.f32 %v303_v29, %v302_v28 }
 0x15e   : > { %v305_v31 = vrot.slane %v304_v30, 1 }
 0x160   : > { %v306_v32 = vadd.f32 %v305_v31, %v304_v30 }
 0x162   : > { %636 = vrcp.f32 %v306_v32 }
 0x16c   : > { %v637_v33 = vpop.eup %636 }
 0x16d   : > { %370 = vxpose.xlu0.b32.start.end [1/1] (short) (narrow) %v637_v33, 8 }
 0x196   : > { %630 = vset.pattern.permute.xlu0 %v778_v14 }
 0x1bb   : > { %v316_v34 = vpop.trf.xlu0 }
 0x1bc   : > { %564 = vmatmul.mubr.msk.bf16.vlgmr.msra.gmra.mrb[0].mxu1 %vm324_vm2, %v316_v34 }
 0x1ed   : > { %v386_v35 = vpop.trf.xlu0 }
 0x1ee   : > { %404 = vperm.xlu1 %629, %v386_v35  }
 0x26d   : > { %v405_v36 = vpop.permute.xlu1 %404 }
 0x28f   : > { %v362_v37 = vpop.f32.mrb[0].mxu1 }
 0x290   : > { %v407_v38 = vmul.f32 %v405_v36, %v362_v37  ;;  %v565_v39 = vpop.f32.mrb[1].mxu1 }
 0x291   : > { %v365_v40 = vpop.f32.mrb[2].mxu1 }
 0x292   : > { %638 = vtanh.f32 %v407_v38  ;;  %v566_v41 = vpop.f32.mrb[3].mxu1 }
 0x29c   : > { %v639_v42 = vpop.eup %638 }
 0x29d   : > { %409 = vadd.xlane.f32.xlu1 %v639_v42 }
 0x32a   : > { %v410_v43 = vpop.xlane.xlu1 %409 }
 0x32b   : > { %v412_v44 = vmul.f32 0.0078125, %v410_v43 }
 0x32d   : > { %v413_v45 = vsub.f32 %v639_v42, %v412_v44 }
 0x32f   : > { %v414_v46 = vmul.f32 %v413_v45, %v413_v45 }
 0x331   : > { %415 = vadd.xlane.f32.xlu0 %v414_v46 }
 0x3be   : > { %v416_v47 = vpop.xlane.xlu0 %415 }
 0x3bf   : > { %v417_v48 = vmul.f32 0.0078125, %v416_v47 }
 0x3c1   : > { %v418_v49 = vadd.f32 1e-05, %v417_v48 }
 0x3c3   : > { %640 = vrsqrt.f32 %v418_v49 }
 0x3cd   : > { %v641_v50 = vpop.eup %640 }
 0x3ce   : > { %v420_v52 = vmul.f32 %v641_v50, %v413_v45 }
 0x3d0   : > { %v427_v54 = vmul.f32 %v544_v51, %v420_v52 }
 0x3d2   : > { %v434_v55 = vadd.f32 %v545_v53, %v427_v54 }
 0x3d4   : > { %v435_v56 = vpack.c.bf16 %v434_v55, %v434_v55 }
 0x3d6   : > { %436 = vst [vmem:[%s228_s30] sm:$0xf] %v435_v56 }
 0x3d7   : > { %713 = shalt.err (!%p710_p12)
}
 0x3d8   : > { %s714_s5 = scalar_lea.hbm %s967_s13, 64  ;;  %s718_s29 = scalar_lea.hbm %s1014_s4, 256 }
 0x3d9   : > { %p715_p0 = scmp.ne.s32.totalorder %s967_s13, %s714_s5  ;;  %p719_p13 = scmp.lt.u32.totalorder %s967_s13, %s1014_s4 }
 0x3da   : > { %p720_p7 = scmp.lt.u32.totalorder %s718_s29, %s714_s5  ;;  %p722_p8 = scmp.lt.u32.totalorder %s714_s5, %s967_s13 }
 0x3db   : > { %p716_p3 = pnand %p715_p0, %p1032_p9 }
 0x3dc   : > { %p721_p6 = por %p720_p7, %p719_p13 }
 0x3dd   : > { %p717_p11 = pneg %p716_p3 }
 0x3de   : > { %p723_p10 = por %p722_p8, %p721_p6 }
 0x3e0   : > { %p724_p5 = pnand %p723_p10, %p717_p11 }
 0x3e2   : > { %727 = shalt.err (!%p724_p5)
}
 0x3e3   : > { %573 = dma.vmem_to_hbm [thread:$0]  (%p1032_p9), %s969_s7, 64, %s967_s13, %s438_s14  }
 0x3e4 PF: > { %p590_p1 = scmp.ge.s32.totalorder %s770_s18, 2  ;;  %s463_s20 = sand.u32 1, %s758_s15  }
 0x3e5   : > { %p1033_p2 = scmp.ne.s32.totalorder %s1023_s28, 0  ;;  %s464_s6 = scalar_lea.sflag [#allocation4], %s463_s20 }
 0x3e7   : > { %p584_p4 = pnand %p590_p1, %p1033_p2 }
 0x3e9   : > { %753 = dma.done.wait (!%p584_p4), %s464_s6, 64  }
 0x3ea   : > { %755 = vsyncadd (!%p584_p4), %s464_s6, 4294967232  ;;  %p18_p12 = scmp.ge.s32.totalorder %s830_s21, 6   ;;  %s1034_s15 = smov %s762_s16 }
 0x3eb   : > { %s1035_s16 = smov %s766_s17  ;;  %s1036_s17 = smov %s842_s24 }
 0x3ec   : > { %s1037_s18 = smov %s830_s21  ;;  %20 = sbr.rel (!%p18_p12) target bundleno = 6 (0x6), region = 85 }
 0x3f3   :  { %469 = vsyncpa [#allocation3], 1 }
 0x3f4   :  { %471 = vsyncpa [#allocation3 + $0x1], 1 }
 0x3f5   :  { %472 = vsyncpa [#allocation6], 1 }
 0x3f6   :  { %473 = vsyncpa [#allocation4], 1 }
 0x3f7   :  { %475 = vsyncpa [#allocation4 + $0x1], 1 }

</bundles_post_ra>
